<compile_context>
chip_gen: v5e
topology: v5e:2x2
jax: 0.10.0
libtpu: 0.0.40
codegen_flags: <defaults>
</compile_context>

<pallas_src>
import functools

import jax
import jax.numpy as jnp
from jax.experimental import pallas as pl
from jax.experimental.pallas import tpu as pltpu

LANE = 128


def _round_up(n, m):
    return ((n + m - 1) // m) * m


def _pick_batch_tile(bp):
    """Largest sublane-aligned batch tile that still yields >=2 grid blocks
    (so v7x's two TensorCores both get work); falls back to a single block."""
    for tb in (128, 64, 32, 16, 8):
        if bp % tb == 0 and bp // tb >= 2:
            return tb
    return bp


def nlunet_kernel(x_ref, wbig_ref, wlinb_ref, out_ref, *, n_windows, cp):
    # x_ref:     (TB, Fp)     bf16  flattened (seq, feat+1, zero-pad) per row
    # wbig_ref:  (Fp, L*Cp)   bf16  block-Toeplitz conv weight (+ bias channel)
    # wlinb_ref: (Cp, Kp)     bf16  W_lin^T in rows 0:C, folded bias in row C
    # out_ref:   (TB, Kp)     f32   lane-dense (Kp = 128) unmasked store
    # MXU push 1: all L windows x all channels in one matmul, f32 accumulate.
    conv = jnp.dot(x_ref[...], wbig_ref[...],
                   preferred_element_type=jnp.float32)        # (TB, L*Cp) f32

    # Max over time: tree of maxima over lane-aligned 128-wide column blocks.
    blocks = [conv[:, t * cp:(t + 1) * cp] for t in range(n_windows)]
    while len(blocks) > 1:
        nxt = [jnp.maximum(blocks[i], blocks[i + 1])
               for i in range(0, len(blocks) - 1, 2)]
        if len(blocks) % 2:
            nxt.append(blocks[-1])
        blocks = nxt
    pooled = blocks[0]                                        # (TB, Cp) f32

    # MXU push 2: final linear.  pooled[:, C] == 1, so row C of wlinb adds the
    # folded (conv + linear) bias -- no sublane slice, no broadcast add.
    out_ref[...] = jnp.dot(pooled.astype(wlinb_ref.dtype), wlinb_ref[...],
                           preferred_element_type=jnp.float32)


def nlunet_forward(x, w_conv, b_conv, w_lin, b_lin):
    """x: (B, S, D); w_conv: (C, 1, ws, D) [torch Conv2d layout];
    b_conv: (C,); w_lin: (K, C) [torch Linear layout]; b_lin: (K,)."""
    B, S, D = x.shape
    C, _, ws, Dw = w_conv.shape
    assert Dw == D
    K = w_lin.shape[0]
    L = S - ws + 1
    assert L >= 1

    cp = _round_up(C + 1, LANE)      # conv channels + 1 bias channel, lane-pad
    kp = _round_up(K, LANE)          # output classes, lane-pad
    d1 = D + 1                       # + constant-1 feature feeding the bias ch.
    f = S * d1
    fp = _round_up(f, LANE)
    bp = _round_up(B, 8)             # enforce sublane-aligned batch (pad rows)
    tb = _pick_batch_tile(bp)

    # ---- activation layout (only per-call prep; no im2col duplication) -----
    x_aug = jnp.zeros((bp, S, d1), jnp.float32)
    x_aug = x_aug.at[:B, :, :D].set(x)
    x_aug = x_aug.at[:, :, D].set(1.0)                       # constant-1 feature
    x_k = jnp.zeros((bp, fp), jnp.bfloat16)
    x_k = x_k.at[:, :f].set(x_aug.reshape(bp, f).astype(jnp.bfloat16))

    # ---- parameter prep (done once / cacheable in a serving loop) ----------
    # Block-Toeplitz conv weight: column block t holds window t's weights.
    w_idc = jnp.transpose(w_conv[:, 0, :, :], (1, 2, 0))     # (ws, D, C)
    wbig = jnp.zeros((fp, L * cp), jnp.float32)
    for t in range(L):
        for i in range(ws):
            s = t + i
            wbig = wbig.at[s * d1:s * d1 + D, t * cp:t * cp + C].set(w_idc[i])
        # Route the constant-1 feature of position t to padded channel C so
        # conv[:, t*cp + C] == 1 for every window  ->  pooled[:, C] == 1.
        wbig = wbig.at[t * d1 + D, t * cp + C].set(1.0)
    wbig = wbig.astype(jnp.bfloat16)

    # Packed linear weight: rows 0:C = W_lin^T, row C = folded bias
    #   max_t(s_t + b_conv) @ W^T + b_lin == max_t(s_t) @ W^T + (b_conv @ W^T + b_lin)
    b_eff = b_conv @ w_lin.T + b_lin                          # (K,)
    wlinb = jnp.zeros((cp, kp), jnp.float32)
    wlinb = wlinb.at[:C, :K].set(w_lin.T)
    wlinb = wlinb.at[C, :K].set(b_eff)
    wlinb = wlinb.astype(jnp.bfloat16)

    kernel = functools.partial(nlunet_kernel, n_windows=L, cp=cp)
    out = pl.pallas_call(
        kernel,
        out_shape=jax.ShapeDtypeStruct((bp, kp), jnp.float32),
        grid=(bp // tb,),
        in_specs=[
            pl.BlockSpec((tb, fp), lambda j: (j, 0)),         # batch-block rows
            pl.BlockSpec((fp, L * cp), lambda j: (0, 0)),     # weights: DMA once,
            pl.BlockSpec((cp, kp), lambda j: (0, 0)),         # resident across steps
        ],
        out_specs=pl.BlockSpec((tb, kp), lambda j: (j, 0)),   # lane-dense store
        compiler_params=pltpu.CompilerParams(
            dimension_semantics=("parallel",),                # v7x: 2-TC sharding
            vmem_limit_bytes=32 * 1024 * 1024,
        ),
    )(x_k, wbig, wlinb)
    return out[:B, :K]


def nlunet_reference(x, w_conv, b_conv, w_lin, b_lin):
    """Pure-JAX f32 reference matching the PyTorch forward exactly."""
    x4 = x[:, None, :, :]                                    # (B, 1, S, D) NCHW
    conv = jax.lax.conv_general_dilated(
        x4, w_conv, window_strides=(1, 1), padding="VALID",
        dimension_numbers=("NCHW", "OIHW", "NCHW"),
    )                                                        # (B, C, L, 1)
    conv = conv + b_conv[None, :, None, None]
    conv = conv[..., 0]                                      # squeeze(3)
    pooled = jnp.max(conv, axis=2)                           # max over time
    return pooled @ w_lin.T + b_lin                          # (B, K)


if __name__ == "__main__":
    # NLUNet(word_dim=10, window_size=3, out_channels=15, K=3); x: (30, 5, 10)
    word_dim, window_size, out_channels, K = 10, 3, 15, 3
    B, S = 30, 5          # B=30 exercises the batch padding path (30 -> 32)

    key = jax.random.PRNGKey(0)
    kx, kwc, kbc, kwl, kbl = jax.random.split(key, 5)

    x = jax.random.normal(kx, (B, S, word_dim), dtype=jnp.float32)

    # Deterministic synthetic parameters (torch-like uniform init ranges).
    fan_conv = 1 * window_size * word_dim
    bc = 1.0 / jnp.sqrt(jnp.float32(fan_conv))
    w_conv = jax.random.uniform(kwc, (out_channels, 1, window_size, word_dim),
                                minval=-bc, maxval=bc, dtype=jnp.float32)
    b_conv = jax.random.uniform(kbc, (out_channels,), minval=-bc, maxval=bc,
                                dtype=jnp.float32)
    bl = 1.0 / jnp.sqrt(jnp.float32(out_channels))
    w_lin = jax.random.uniform(kwl, (K, out_channels), minval=-bl, maxval=bl,
                               dtype=jnp.float32)
    b_lin = jax.random.uniform(kbl, (K,), minval=-bl, maxval=bl, dtype=jnp.float32)

    out = nlunet_forward(x, w_conv, b_conv, w_lin, b_lin)
    out = jax.block_until_ready(out)

    ref = nlunet_reference(x, w_conv, b_conv, w_lin, b_lin)
    assert out.shape == (B, K)
    # bf16 MXU operands (f32 accumulation) -> looser tolerance than pure f32.
    assert jnp.allclose(out, ref, atol=3e-2, rtol=3e-2), (out, ref)

    print("KERNEL_OK")
</pallas_src>

<mosaic_0001>
module attributes {stable_mosaic.version = 11 : i64} {
  func.func @nlunet_kernel(%arg0: i32, %arg1: memref<16x128xbf16, #tpu.memory_space<vmem>>, %arg2: memref<128x384xbf16, #tpu.memory_space<vmem>>, %arg3: memref<128x128xbf16, #tpu.memory_space<vmem>>, %arg4: memref<16x128xf32, #tpu.memory_space<vmem>>) attributes {dimension_semantics = [#tpu.dimension_semantics<parallel>], iteration_bounds = array<i64: 2>, scalar_prefetch = 0 : i64, scratch_operands = 0 : i64, tpu.core_type = #tpu.core_type<tc>, window_params = [{transform_indices = @transform_0, window_bounds = array<i64: 16, 128>}, {pipeline_mode = #tpu.pipeline_mode<synchronous>, transform_indices = @transform_1, window_bounds = array<i64: 128, 384>}, {pipeline_mode = #tpu.pipeline_mode<synchronous>, transform_indices = @transform_2, window_bounds = array<i64: 128, 128>}, {transform_indices = @transform_3, window_bounds = array<i64: 16, 128>}]} {
    %c0 = arith.constant 0 : index
    %c0_0 = arith.constant 0 : index
    %0 = vector.load %arg1[%c0, %c0_0] : memref<16x128xbf16, #tpu.memory_space<vmem>>, vector<16x128xbf16>
    %c0_1 = arith.constant 0 : index
    %c0_2 = arith.constant 0 : index
    %1 = vector.load %arg2[%c0_1, %c0_2] : memref<128x384xbf16, #tpu.memory_space<vmem>>, vector<128x384xbf16>
    %cst = arith.constant dense<0.000000e+00> : vector<16x384xf32>
    %2 = tpu.matmul %0, %1, %cst {dimension_numbers = #tpu.dot_dimension_numbers<[1], [0], [0], [1], [0, 0, 1, 1], [], []>} : vector<16x128xbf16>, vector<128x384xbf16>, vector<16x384xf32> -> vector<16x384xf32>
    %3 = vector.extract_strided_slice %2 {offsets = [0, 0], sizes = [16, 128], strides = [1, 1]} : vector<16x384xf32> to vector<16x128xf32>
    %4 = vector.extract_strided_slice %2 {offsets = [0, 128], sizes = [16, 128], strides = [1, 1]} : vector<16x384xf32> to vector<16x128xf32>
    %5 = vector.extract_strided_slice %2 {offsets = [0, 256], sizes = [16, 128], strides = [1, 1]} : vector<16x384xf32> to vector<16x128xf32>
    %6 = arith.maximumf %3, %4 : vector<16x128xf32>
    %7 = arith.maximumf %6, %5 : vector<16x128xf32>
    %8 = arith.truncf %7 : vector<16x128xf32> to vector<16x128xbf16>
    %c0_3 = arith.constant 0 : index
    %c0_4 = arith.constant 0 : index
    %9 = vector.load %arg3[%c0_3, %c0_4] : memref<128x128xbf16, #tpu.memory_space<vmem>>, vector<128x128xbf16>
    %cst_5 = arith.constant dense<0.000000e+00> : vector<16x128xf32>
    %10 = tpu.matmul %8, %9, %cst_5 {dimension_numbers = #tpu.dot_dimension_numbers<[1], [0], [0], [1], [0, 0, 1, 1], [], []>} : vector<16x128xbf16>, vector<128x128xbf16>, vector<16x128xf32> -> vector<16x128xf32>
    %c0_6 = arith.constant 0 : index
    %c0_7 = arith.constant 0 : index
    %11 = vector.load %arg4[%c0_6, %c0_7] : memref<16x128xf32, #tpu.memory_space<vmem>>, vector<16x128xf32>
    tpu.vector_store %arg4[%c0_6, %c0_7], %10 {strides = array<i32>} : memref<16x128xf32, #tpu.memory_space<vmem>>, vector<16x128xf32>,
    return
  }
  func.func @transform_0(%arg0: i32) -> (i32, i32) {
    %c0_i32 = arith.constant 0 : i32
    %c0_i32_0 = arith.constant 0 : i32
    return %arg0, %c0_i32 : i32, i32
  }
  func.func @transform_1(%arg0: i32) -> (i32, i32) {
    %c0_i32 = arith.constant 0 : i32
    %c0_i32_0 = arith.constant 0 : i32
    %c0_i32_1 = arith.constant 0 : i32
    return %c0_i32, %c0_i32_0 : i32, i32
  }
  func.func @transform_2(%arg0: i32) -> (i32, i32) {
    %c0_i32 = arith.constant 0 : i32
    %c0_i32_0 = arith.constant 0 : i32
    %c0_i32_1 = arith.constant 0 : i32
    return %c0_i32, %c0_i32_0 : i32, i32
  }
  func.func @transform_3(%arg0: i32) -> (i32, i32) {
    %c0_i32 = arith.constant 0 : i32
    %c0_i32_0 = arith.constant 0 : i32
    return %arg0, %c0_i32 : i32, i32
  }
}

</mosaic_0001>

<bundles_post_ra>
// kernel: tpu_custom_call.1
= control target key start
LH: loop header
LB: loop body
LE: loop exit
PB: predicated region body
PF: predicated region fallthrough
CT: control target
= control target key end

     0   :  { %8 = vsyncpa [#allocation3], 0  ;;  %s1228_s0 = inlined_call_operand.hbm [shape: bf16[32,128], index: 0, kind: input, shape index: {}]   ;;  %s1229_s1 = inlined_call_operand.hbm [shape: bf16[128,384], index: 1, kind: input, shape index: {}]   ;;  %s1230_s2 = inlined_call_operand.hbm [shape: bf16[128,128], index: 2, kind: input, shape index: {}]   ;;  %s1231_s3 = inlined_call_operand.hbm [shape: f32[32,128], index: 3, kind: output, shape index: {}]  }
   0x1   :  { %10 = vsyncpa [#allocation3 + $0x1], 0 }
   0x2   :  { %11 = vsyncpa [#allocation6], 0 }
   0x3   :  { %12 = vsyncpa [#allocation4], 0 }
   0x4   :  { %14 = vsyncpa [#allocation4 + $0x1], 0  ;;  %s1077_s12 = smov 0   ;;  %s1079_s13 = smov 0  }
   0x5   :  { %s1081_s14 = smov 0   ;;  %s1083_s15 = smov 0  }
   0x6 LB: > { %s1098_s16 = sadd.s32 4294967295, %s1047_s15   ;;  %s629_s17 = sadd.s32 4294967294, %s1047_s15   ;;  %s1047_s15 = sphi %s1083_s15, %s1241_s15   ;;  %s1043_s14 = sphi %s1081_s14, %s1240_s14   ;;  %s1039_s13 = sphi %s1079_s13, %s1239_s13   ;;  %s1035_s12 = sphi %s1077_s12, %s1238_s12  }
   0x7   : > { %p40_p0 = scmp.ne.s32.totalorder %s1039_s13, %s1035_s12  ;;  %p41_p1 = scmp.eq.s32.totalorder %s1098_s16, 0 }
   0x8   : > { %p106_p2 = scmp.eq.s32.totalorder %s1098_s16, 1  ;;  %p112_p3 = scmp.eq.s32.totalorder %s629_s17, 1 }
   0x9   : > { %p1107_p4 = por %p41_p1, %p40_p0  ;;  %p630_p5 = scmp.ge.s32.totalorder %s1047_s15, 1 }
   0xa   : > { %p1112_p6 = por %p112_p3, %p40_p0  ;;  %p119_p7 = scmp.lt.s32.totalorder %s1047_s15, 3 }
   0xb   : > { %s130_s22 = sshll.u32 %s1229_s1, 4  ;;  %s1049_s24 = smov [#allocation5]   ;;  %s131_s22 = int_to_ptr.hbm [resolvable:$true] %s130_s22 }
   0xc   : > { %p1120_p8 = pnand %p630_p5, %p119_p7  ;;  %s132_s25 = sshll.u32 %s1049_s24, 4  ;;  %s133_s25 = int_to_ptr.vmem [resolvable:$true] %s132_s25 }
   0xd   : > { %s144_s28 = sshll.u32 %s1230_s2, 4  ;;  %s1050_s29 = smov 192   ;;  %s145_s28 = int_to_ptr.hbm [resolvable:$true] %s144_s28 }
   0xe   : > { %p826_p9 = pneg %p1120_p8  ;;  %s1051_s30 = smov 12  }
   0xf   : > { %s1052_s4 = smov [#allocation7]   ;;  %s1053_s6 = smov 64  }
  0x10   : > { %p827_p10 = pnand %p826_p9, %p41_p1  ;;  %s146_s5 = sshll.u32 %s1052_s4, 4  ;;  %s147_s5 = int_to_ptr.vmem [resolvable:$true] %s146_s5 }
  0x11   : > { %s1054_s7 = smov 4   ;;  %s1136_s8 = sadd.s32 1, %s1047_s15  }
  0x12   : > { %829 = dma.hbm_to_vmem [thread:$0]  (!%p827_p10), %s131_s22, 3072, %s133_s25, [#allocation6], %s1050_s29, %s1050_s29, %s1051_s30  }
  0x13   : > { %832 = dma.hbm_to_vmem [thread:$0]  (!%p827_p10), %s145_s28, 1024, %s147_s5, [#allocation6], %s1053_s6, %s1053_s6, %s1054_s7  }
  0x14   : > { %s24_s9 = ssub.s32 %s1047_s15, %s1136_s8  ;;  %s27_s10 = sadd.s32 1, %s1043_s14 }
  0x15   : > { %p25_p12 = scmp.eq.s32.totalorder %s24_s9, 0  ;;  %p34_p13 = scmp.ne.s32.totalorder %s1043_s14, %s1039_s13 }
  0x16   : > { %p35_p0 = scmp.eq.s32.totalorder %s1047_s15, 0  ;;  %p843_p7 = scmp.lt.s32.totalorder %s1047_s15, 2 }
  0x17   : > { %s1145_s11 = scalar_select %p25_p12, %s1043_s14, %s27_s10  }
  0x18   : > { %p36_p3 = por %p35_p0, %p34_p13  ;;  %p1149_p5 = por %p106_p2, %p34_p13 }
  0x19   : > { %s160_s20 = sand.u32 1, %s1043_s14   ;;  %s779_s22 = sshll.u32 %s1047_s15, 3 }
  0x1a   : > { %s634_s21 = sshll.u32 %s160_s20, 3  ;;  %s169_s26 = scalar_lea.hbm %s1228_s0, %s779_s22 }
  0x1b   : > { %s164_s27 = scalar_lea.vmem [#allocation2], %s634_s21  ;;  %s170_s29 = sshll.u32 %s169_s26, 4  ;;  %s171_s29 = int_to_ptr.hbm [resolvable:$true] %s170_s29 }
  0x1c   : > { %s172_s28 = sshll.u32 %s164_s27, 4  ;;  %p1159_p9 = pnand %p843_p7, %p36_p3  ;;  %s173_s28 = int_to_ptr.vmem [resolvable:$true] %s172_s28 }
  0x1d   : > { %s161_s4 = scalar_lea.sflag [#allocation3], %s160_s20  ;;  %s947_s5 = sshra.s32 %s171_s29, 4  ;;  %s948_s5 = int_to_ptr.hbm [resolvable:$true] %s947_s5 }
  0x1e   : > { %s949_s9 = scalar_lea.hbm %s948_s5, 8  ;;  %p951_p10 = pneg %p1159_p9 }
  0x1f   : > { %p950_p2 = scmp.ne.s32.totalorder %s948_s5, %s949_s9  ;;  %s954_s22 = scalar_lea.hbm %s1228_s0, 16 }
  0x20   : > { %p955_p0 = scmp.lt.s32.totalorder %s948_s5, %s1228_s0  ;;  %p956_p3 = scmp.lt.s32.totalorder %s954_s22, %s949_s9 }
  0x21   : > { %p952_p12 = pnand %p951_p10, %p950_p2 }
  0x22   : > { %p957_p7 = por %p956_p3, %p955_p0 }
  0x23   : > { %p953_p13 = pneg %p952_p12 }
  0x25   : > { %p958_p11 = pnand %p957_p7, %p953_p13 }
  0x27   : > { %961 = shalt.err (!%p958_p11)
}
  0x28   : > { %836 = dma.hbm_to_vmem [thread:$0]  (!%p1159_p9), %s171_s29, 128, %s173_s28, %s161_s4, %s1053_s6, %s1053_s6, %s1054_s7  }
  0x29   : > { %184 = sbr.rel (%p1120_p8) target bundleno = 373 (0x175), region = 32  ;;  %s1179_s20 = sand.u32 (!%p1120_p8), 1, %s1039_s13  }
  0x2a   : > { %s638_s26 = sshll.u32 (!%p1120_p8), %s1179_s20, 3  ;;  %s187_s27 = scalar_lea.sflag (!%p1120_p8), [#allocation3], %s1179_s20 }
  0x2b   : > { %s1183_s5 = scalar_lea.vmem (!%p1120_p8), [#allocation2], %s638_s26 }
  0x2e   : > { %1022 = dma.done.wait (%p1107_p4), %s187_s27, 128  }
  0x2f   : > { %1024 = vsyncadd (%p1107_p4), %s187_s27, 4294967168 }
  0x30   : > { %1026 = dma.done.wait (%p41_p1), [#allocation6], 4096  }
  0x31   : > { %1028 = vsyncadd (%p41_p1), [#allocation6], 4294963200  ;;  %v732_v0 = vld [vmem:[#allocation5 + $0xa8] sm:$0xf]  ;;  %v803_v1 = vld [vmem:[#allocation5 + $0xb0] sm:$0xf0] }
  0x32   : > { %v802_v2 = vld [vmem:[#allocation5 + $0xac] sm:$0xf]  ;;  %v733_v3 = vor.u32 %v803_v1, %v732_v0  ;;  %v734_v4 = vld [vmem:[#allocation5 + $0xb4] sm:$0xf0]  ;;  %v740_v5 = vld [vmem:[#allocation5 + $0xb0] sm:$0xf] }
  0x33   : > { %v804_v6 = vld [vmem:[#allocation5 + $0xb8] sm:$0xf0]  ;;  %v737_v7 = vor.u32 %v802_v2, %v734_v4  ;;  %v720_v9 = vld [vmem:[#allocation5 + $0x90] sm:$0xf]  ;;  %v799_v11 = vld [vmem:[#allocation5 + $0x94] sm:$0xf] }
  0x34   : > { %v741_v8 = vor.u32 %v804_v6, %v740_v5  ;;  %v800_v10 = vld [vmem:[#allocation5 + $0x98] sm:$0xf0]  ;;  %394 = vmatpush.bf16.msra.mxu0 %v733_v3  ;;  %v722_v13 = vld [vmem:[#allocation5 + $0x9c] sm:$0xf0]  ;;  %v728_v14 = vld [vmem:[#allocation5 + $0x98] sm:$0xf] }
  0x35   : > { %v721_v12 = vor.u32 %v800_v10, %v720_v9  ;;  %v801_v15 = vld [vmem:[#allocation5 + $0xa0] sm:$0xf0]  ;;  %408 = vmatpush.bf16.msra.mxu1 %v737_v7  ;;  %v725_v16 = vor.u32 %v799_v11, %v722_v13  ;;  %v708_v18 = vld [vmem:[#allocation5 + $0x78] sm:$0xf]  ;;  %v796_v20 = vld [vmem:[#allocation5 + $0x7c] sm:$0xf] }
  0x36   : > { %422 = vmatpush.bf16.msra.mxu2 %v741_v8  ;;  %v729_v17 = vor.u32 %v801_v15, %v728_v14  ;;  %v797_v19 = vld [vmem:[#allocation5 + $0x80] sm:$0xf0]  ;;  %v710_v21 = vld [vmem:[#allocation5 + $0x84] sm:$0xf0]  ;;  %v716_v22 = vld [vmem:[#allocation5 + $0x80] sm:$0xf] }
  0x37   : > { %v798_v23 = vld [vmem:[#allocation5 + $0x88] sm:$0xf0]  ;;  %v709_v24 = vor.u32 %v797_v19, %v708_v18  ;;  %v713_v25 = vor.u32 %v796_v20, %v710_v21  ;;  %v696_v27 = vld [vmem:[#allocation5 + $0x60] sm:$0xf]  ;;  %v793_v29 = vld [vmem:[#allocation5 + $0x64] sm:$0xf] }
  0x38   : > { %395 = vmatpush.bf16.msra.mxu0 %v721_v12  ;;  %v717_v26 = vor.u32 %v798_v23, %v716_v22  ;;  %v794_v28 = vld [vmem:[#allocation5 + $0x68] sm:$0xf0]  ;;  %v698_v30 = vld [vmem:[#allocation5 + $0x6c] sm:$0xf0]  ;;  %v704_v31 = vld [vmem:[#allocation5 + $0x68] sm:$0xf] }
  0x39   : > { %409 = vmatpush.bf16.msra.mxu1 %v725_v16  ;;  %v795_v32 = vld [vmem:[#allocation5 + $0x70] sm:$0xf0]  ;;  %v697_v33 = vor.u32 %v794_v28, %v696_v27  ;;  %v701_v34 = vor.u32 %v793_v29, %v698_v30  ;;  %v684_v36 = vld [vmem:[#allocation5 + $0x48] sm:$0xf]  ;;  %v790_v38 = vld [vmem:[#allocation5 + $0x4c] sm:$0xf] }
  0x3a   : > { %423 = vmatpush.bf16.msra.mxu2 %v729_v17  ;;  %v705_v35 = vor.u32 %v795_v32, %v704_v31  ;;  %v791_v37 = vld [vmem:[#allocation5 + $0x50] sm:$0xf0]  ;;  %v686_v39 = vld [vmem:[#allocation5 + $0x54] sm:$0xf0]  ;;  %v692_v40 = vld [vmem:[#allocation5 + $0x50] sm:$0xf] }
  0x3b   : > { %v792_v41 = vld [vmem:[#allocation5 + $0x58] sm:$0xf0]  ;;  %v685_v42 = vor.u32 %v791_v37, %v684_v36  ;;  %v672_v43 = vld [vmem:[#allocation5 + $0x30] sm:$0xf]  ;;  %v689_v44 = vor.u32 %v790_v38, %v686_v39  ;;  %v787_v47 = vld [vmem:[#allocation5 + $0x34] sm:$0xf] }
  0x3c   : > { %396 = vmatpush.bf16.msra.mxu0 %v709_v24  ;;  %v693_v45 = vor.u32 %v792_v41, %v692_v40  ;;  %v788_v46 = vld [vmem:[#allocation5 + $0x38] sm:$0xf0]  ;;  %v674_v49 = vld [vmem:[#allocation5 + $0x3c] sm:$0xf0]  ;;  %v680_v50 = vld [vmem:[#allocation5 + $0x38] sm:$0xf] }
  0x3d   : > { %410 = vmatpush.bf16.msra.mxu1 %v713_v25  ;;  %v812_v48 = vld [vmem:[#allocation7 + $0x38] sm:$0xff]  ;;  %v789_v51 = vld [vmem:[#allocation5 + $0x40] sm:$0xf0]  ;;  %v811_v52 = vld [vmem:[#allocation7 + $0x30] sm:$0xff]  ;;  %v673_v53 = vor.u32 %v788_v46, %v672_v43  ;;  %v677_v54 = vor.u32 %v787_v47, %v674_v49  ;;  %s641_s18 = sshll.u32 %s1179_s20, 4  ;;  %s813_s23 = sshll.u32 %s1098_s16, 4 }
  0x3e   : > { %424 = vmatpush.bf16.msra.mxu2 %v717_v26  ;;  %505 = vmatpush.bf16.msra.mxu3 %v812_v48  ;;  %v681_v55 = vor.u32 %v789_v51, %v680_v50  ;;  %v660_v56 = vld [vmem:[#allocation5 + $0x18] sm:$0xf]  ;;  %v785_v57 = vld [vmem:[#allocation5 + $0x20] sm:$0xf0]  ;;  %v784_v58 = vld [vmem:[#allocation5 + $0x1c] sm:$0xf]  ;;  %s533_s28 = scalar_lea.hbm %s1231_s3, %s813_s23 }
  0x3f   : > { %v662_v59 = vld [vmem:[#allocation5 + $0x24] sm:$0xf0]  ;;  %v668_v60 = vld [vmem:[#allocation5 + $0x20] sm:$0xf]  ;;  %v786_v61 = vld [vmem:[#allocation5 + $0x28] sm:$0xf0]  ;;  %v661_v63 = vor.u32 %v785_v57, %v660_v56 }
  0x40   : > { %397 = vmatpush.bf16.msra.mxu0 %v697_v33  ;;  %v810_v62 = vld [vmem:[#allocation7 + $0x28] sm:$0xff]  ;;  %v665_v0 = vor.u32 %v784_v58, %v662_v59  ;;  %v669_v1 = vor.u32 %v786_v61, %v668_v60  ;;  %v648_v2 = vld [vmem:[#allocation5] sm:$0xf]  ;;  %v781_v4 = vld [vmem:[#allocation5 + $0x4] sm:$0xf]  ;;  %s223_s29 = scalar_lea.vmem [#allocation8], %s641_s18 }
  0x41   : > { %411 = vmatpush.bf16.msra.mxu1 %v701_v34  ;;  %v782_v3 = vld [vmem:[#allocation5 + $0x8] sm:$0xf0]  ;;  %v650_v5 = vld [vmem:[#allocation5 + $0xc] sm:$0xf0]  ;;  %v656_v6 = vld [vmem:[#allocation5 + $0x8] sm:$0xf] }
  0x42   : > { %425 = vmatpush.bf16.msra.mxu2 %v705_v35  ;;  %506 = vmatpush.bf16.msra.mxu3 %v811_v52  ;;  %v783_v7 = vld [vmem:[#allocation5 + $0x10] sm:$0xf0]  ;;  %v649_v8 = vor.u32 %v782_v3, %v648_v2  ;;  %v653_v9 = vor.u32 %v781_v4, %v650_v5  ;;  %v809_v12 = vld [vmem:[#allocation7 + $0x20] sm:$0xff]  ;;  %v808_v13 = vld [vmem:[#allocation7 + $0x18] sm:$0xff]  ;;  %s534_s30 = sshll.u32 %s223_s29, 4  ;;  %s536_s4 = sshll.u32 %s533_s28, 4  ;;  %s535_s30 = int_to_ptr.vmem [resolvable:$true] %s534_s30  ;;  %s537_s4 = int_to_ptr.hbm [resolvable:$true] %s536_s4 }
  0x43   : > { %v657_v10 = vor.u32 %v783_v7, %v656_v6  ;;  %v780_v11 = vld [vmem:[%s1183_s5] sm:$0xff]  ;;  %v806_v15 = vld [vmem:[#allocation7 + $0x8] sm:$0xff]  ;;  %v805_v16 = vld [vmem:[#allocation7] sm:$0xff]  ;;  %s522_s9 = scalar_lea.sflag [#allocation4], %s1179_s20  ;;  %s991_s10 = sshra.s32 %s537_s4, 4  ;;  %s992_s10 = int_to_ptr.hbm [resolvable:$true] %s991_s10 }
  0x44   : > { %398 = vmatpush.bf16.msra.mxu0 %v685_v42  ;;  %v807_v14 = vld [vmem:[#allocation7 + $0x10] sm:$0xff]  ;;  %s993_s21 = scalar_lea.hbm %s992_s10, 16  ;;  %s997_s24 = scalar_lea.hbm %s1231_s3, 32 }
  0x45   : > { %412 = vmatpush.bf16.msra.mxu1 %v689_v44  ;;  %p994_p1 = scmp.ne.s32.totalorder %s992_s10, %s993_s21  ;;  %p998_p11 = scmp.lt.s32.totalorder %s992_s10, %s1231_s3 }
  0x46   : > { %426 = vmatpush.bf16.msra.mxu2 %v693_v45  ;;  %507 = vmatpush.bf16.msra.mxu3 %v810_v62  ;;  %p999_p9 = scmp.lt.s32.totalorder %s997_s24, %s993_s21 }
  0x47   : > { %p995_p4 = pnand %p994_p1, %p1149_p5 }
  0x48   : > { %399 = vmatpush.bf16.msra.mxu0 %v673_v53  ;;  %p1000_p2 = por %p999_p9, %p998_p11 }
  0x49   : > { %413 = vmatpush.bf16.msra.mxu1 %v677_v54  ;;  %p996_p8 = pneg %p995_p4 }
  0x4a   : > { %427 = vmatpush.bf16.msra.mxu2 %v681_v55  ;;  %508 = vmatpush.bf16.msra.mxu3 %v809_v12 }
  0x4b   : > { %p1001_p10 = pnand %p1000_p2, %p996_p8 }
  0x4c   : > { %400 = vmatpush.bf16.msra.mxu0 %v661_v63 }
  0x4d   : > { %414 = vmatpush.bf16.msra.mxu1 %v665_v0 }
  0x4e   : > { %428 = vmatpush.bf16.msra.mxu2 %v669_v1  ;;  %509 = vmatpush.bf16.msra.mxu3 %v808_v13 }
  0x50   : > { %401 = vmatpush.bf16.msra.mxu0 %v649_v8 }
  0x51   : > { %415 = vmatpush.bf16.msra.mxu1 %v653_v9 }
  0x52   : > { %429 = vmatpush.bf16.msra.mxu2 %v657_v10  ;;  %510 = vmatpush.bf16.msra.mxu3 %v807_v14 }
  0x53   : > { %402 = vmatmul.bf16.vlgmr.msra.gmra.mxu0 %v780_v11 }
  0x54   : > { %416 = vmatmul.bf16.vlgmr.msra.gmra.mxu1 %v780_v11 }
  0x55   : > { %430 = vmatmul.bf16.vlgmr.msra.gmra.mxu2 %v780_v11 }
  0x56   : > { %511 = vmatpush.bf16.msra.mxu3 %v806_v15 }
  0x5a   : > { %512 = vmatpush.bf16.msra.mxu3 %v805_v16 }
  0xd0   : > { %v403_v17 = vpop.f32.mrf.mxu0 }
  0xd1   : > { %v417_v18 = vpop.f32.mrf.mxu1 }
  0xd2   : > { %v436_v22 = vmax.f32 %v403_v17, %v417_v18 }
  0xd8   : > { %v431_v19 = vpop.f32.mrf.mxu2  ;;  %v405_v20 = vpop.f32.mrf.mxu0 }
  0xd9   : > { %v419_v21 = vpop.f32.mrf.mxu1  ;;  %v438_v25 = vmax.f32 %v436_v22, %v431_v19 }
  0xda   : > { %v437_v23 = vmax.f32 %v405_v20, %v419_v21 }
  0xe0   : > { %v433_v24 = vpop.f32.mrf.mxu2 }
  0xe1   : > { %v439_v26 = vmax.f32 %v437_v23, %v433_v24 }
  0xe3   : > { %v440_v27 = vpack.c.bf16 %v439_v26, %v438_v25 }
  0xe5   : > { %513 = vmatmul.bf16.vlgmr.msra.gmra.mxu3 %v440_v27 }
 0x168   : > { %v514_v28 = vpop.f32.mrf.mxu3 }
 0x169   : > { %519 = vst [vmem:[%s223_s29] sm:$0xff] %v514_v28 }
 0x170   : > { %v516_v29 = vpop.f32.mrf.mxu3 }
 0x171   : > { %520 = vst [vmem:[%s223_s29 + $0x8] sm:$0xff] %v516_v29 }
 0x172   : > { %1004 = shalt.err (!%p1001_p10)
}
 0x173   : > { %s1055_s20 = smov 128   ;;  %s1056_s27 = smov 8  }
 0x174   : > { %824 = dma.vmem_to_hbm [thread:$0]  (%p1149_p5), %s535_s30, 256, %s537_s4, %s522_s9, %s1055_s20, %s1055_s20, %s1056_s27  }
 0x175 PF: > { %s551_s5 = sand.u32 1, %s1035_s12   ;;  %p1237_p12 = scmp.ge.s32.totalorder %s1047_s15, 2 }
 0x176   : > { %s552_s18 = scalar_lea.sflag [#allocation4], %s551_s5 }
 0x177   : > { %p838_p13 = pnand %p1237_p12, %p1112_p6 }
 0x179   : > { %p839_p0 = pneg %p838_p13 }
 0x17b   : > { %1030 = dma.done.wait (%p839_p0), %s552_s18, 256  }
 0x17c   : > { %1032 = vsyncadd (%p839_p0), %s552_s18, 4294967040  ;;  %p17_p3 = scmp.ge.s32.totalorder %s1136_s8, 4   ;;  %s1238_s12 = smov %s1039_s13 }
 0x17d   : > { %s1239_s13 = smov %s1043_s14  ;;  %s1240_s14 = smov %s1145_s11 }
 0x17e   : > { %s1241_s15 = smov %s1136_s8  ;;  %19 = sbr.rel (!%p17_p3) target bundleno = 6 (0x6), region = 85 }
 0x183   :  { %558 = vsyncpa [#allocation3], 1 }
 0x184   :  { %560 = vsyncpa [#allocation3 + $0x1], 1 }
 0x185   :  { %561 = vsyncpa [#allocation6], 1 }
 0x186   :  { %562 = vsyncpa [#allocation4], 1 }
 0x187   :  { %564 = vsyncpa [#allocation4 + $0x1], 1 }

</bundles_post_ra>
